<compile_context>
chip_gen: v7x
topology: tpu7x:2x2x1
jax: 0.10.0
libtpu: 0.0.40
codegen_flags: <defaults>
</compile_context>

<pallas_src>
import functools

import jax
import jax.numpy as jnp
from jax.experimental import pallas as pl
from jax.experimental.pallas import tpu as pltpu


_NEG = -1e9  # large finite negative (fully masked rows can never produce NaN)


def _default_vmem_limit():
    # v5e/v6e: 128 MiB VMEM/core, v7x: 64 MiB -> scale the scoped limit with headroom.
    try:
        cap = int(pltpu.get_tpu_info().vmem_capacity_bytes)
        if cap <= 0:
            raise ValueError("bad vmem capacity")
        return int(max(32 * 1024 * 1024, min(cap * 3 // 4, 96 * 1024 * 1024)))
    except Exception:
        return 32 * 1024 * 1024


_VMEM_LIMIT = _default_vmem_limit()


# ---------------------------------------------------------------------------
# Tiling helper: biggest tile <= target that divides dim (MXU-aligned), else full dim
# ---------------------------------------------------------------------------

def _tile(dim, target, aligns):
    if dim <= target:
        return dim
    for align in aligns:
        t = (target // align) * align
        while t >= align:
            if dim % t == 0:
                return t
            t -= align
    # TODO(synk): pad + mask awkward dims instead of falling back to one full-dim tile.
    return dim


# ---------------------------------------------------------------------------
# Pallas kernels
# ---------------------------------------------------------------------------

def _maybe_act(y, activation):
    if activation == "gelu":
        # exact (erf-based) gelu, matching torch.nn.functional.gelu default
        return jax.nn.gelu(y, approximate=False)
    return y


def _matmul_bias_kernel(x_ref, w_ref, b_ref, o_ref, acc_ref, *, activation):
    # x: [tm, tk] bf16, w: [tk, tn] bf16 (pre-transposed), b: [1, tn] f32
    @pl.when(pl.program_id(2) == 0)
    def _():
        acc_ref[...] = jnp.zeros_like(acc_ref)

    acc_ref[...] += jnp.dot(x_ref[...], w_ref[...],
                            preferred_element_type=jnp.float32)

    @pl.when(pl.program_id(2) == pl.num_programs(2) - 1)
    def _():
        y = _maybe_act(acc_ref[...] + b_ref[...], activation)
        o_ref[...] = y.astype(o_ref.dtype)


def _matmul_nobias_kernel(x_ref, w_ref, o_ref, acc_ref, *, activation):
    @pl.when(pl.program_id(2) == 0)
    def _():
        acc_ref[...] = jnp.zeros_like(acc_ref)

    acc_ref[...] += jnp.dot(x_ref[...], w_ref[...],
                            preferred_element_type=jnp.float32)

    @pl.when(pl.program_id(2) == pl.num_programs(2) - 1)
    def _():
        o_ref[...] = _maybe_act(acc_ref[...], activation).astype(o_ref.dtype)


def _ln_core(x, g, b):
    mean = jnp.mean(x, axis=-1, keepdims=True)
    xc = x - mean
    var = jnp.mean(xc * xc, axis=-1, keepdims=True)
    return xc * jax.lax.rsqrt(var + 1e-5) * g + b


def _layernorm_kernel(x_ref, g_ref, b_ref, o_ref):
    x = x_ref[...].astype(jnp.float32)
    o_ref[...] = _ln_core(x, g_ref[...], b_ref[...]).astype(o_ref.dtype)


def _matmul_bias_res_ln_kernel(x_ref, w_ref, b_ref, r_ref, g_ref, bln_ref,
                               o_ref, acc_ref):
    # fused: LayerNorm( x @ w + b + residual ) in the final-K epilogue.
    @pl.when(pl.program_id(1) == 0)
    def _():
        acc_ref[...] = jnp.zeros_like(acc_ref)

    acc_ref[...] += jnp.dot(x_ref[...], w_ref[...],
                            preferred_element_type=jnp.float32)

    @pl.when(pl.program_id(1) == pl.num_programs(1) - 1)
    def _():
        y = acc_ref[...] + b_ref[...] + r_ref[...].astype(jnp.float32)
        o_ref[...] = _ln_core(y, g_ref[...], bln_ref[...]).astype(o_ref.dtype)


def _attn_heads(get_q, get_k, get_v, kpm, o_ref, H, Dh, causal, T, S):
    """Per-head attention; all heads of one batch element in one grid step.

    kpm: [1, S] f32 additive key-padding bias.  q is pre-scaled (1/sqrt(Dh) folded
    into the q projection weights).  Softmax normalization is applied to the [T,Dh]
    output instead of the [T,S] probabilities.
    """
    if causal:
        row = jax.lax.broadcasted_iota(jnp.int32, (T, S), 0)
        col = jax.lax.broadcasted_iota(jnp.int32, (T, S), 1)
        causal_bias = jnp.where(col > row, _NEG, 0.0)     # built in-kernel, shared by heads
    # TODO(synk): flash-tile over S (online softmax + running m/l) for long sequences;
    # at these shapes a whole (T,S) score tile per head fits comfortably.
    for h in range(H):                                    # static unroll over heads
        q = get_q(h)                                      # [T, Dh] bf16
        k = get_k(h)                                      # [S, Dh] bf16
        v = get_v(h)                                      # [S, Dh] bf16
        s = jax.lax.dot_general(q, k, (((1,), (1,)), ((), ())),
                                preferred_element_type=jnp.float32)   # [T, S] f32
        s = s + kpm
        if causal:
            s = s + causal_bias
        m = jnp.max(s, axis=-1, keepdims=True)
        e = jnp.exp(s - m)
        denom = jnp.sum(e, axis=-1, keepdims=True)
        o_un = jnp.dot(e.astype(v.dtype), v,
                       preferred_element_type=jnp.float32)            # [T, Dh] f32
        o = o_un * pl.reciprocal(denom, approx=True)                  # EUP slot
        o_ref[0, :, h * Dh:(h + 1) * Dh] = o.astype(o_ref.dtype)


def _self_attention_kernel(qkv_ref, kpm_ref, o_ref, *, H, causal):
    # qkv_ref: [1, T, 3D] bf16 (q part pre-scaled), kpm_ref: [1, 1, T] f32
    # o_ref:   [1, T, D] bf16 (lane-dense, feeds out_proj with a free reshape)
    T = qkv_ref.shape[1]
    D = qkv_ref.shape[2] // 3
    Dh = D // H
    kpm = kpm_ref[0]                                      # [1, T]
    _attn_heads(
        lambda h: qkv_ref[0, :, h * Dh:(h + 1) * Dh],
        lambda h: qkv_ref[0, :, D + h * Dh:D + (h + 1) * Dh],
        lambda h: qkv_ref[0, :, 2 * D + h * Dh:2 * D + (h + 1) * Dh],
        kpm, o_ref, H, Dh, causal, T, T)


def _cross_attention_kernel(q_ref, k_ref, v_ref, kpm_ref, o_ref, *, H):
    # q_ref: [1, T, D] bf16 (pre-scaled), k_ref/v_ref: [1, S, D] bf16, kpm: [1, 1, S] f32
    T = q_ref.shape[1]
    D = q_ref.shape[2]
    S = k_ref.shape[1]
    Dh = D // H
    kpm = kpm_ref[0]                                      # [1, S]
    _attn_heads(
        lambda h: q_ref[0, :, h * Dh:(h + 1) * Dh],
        lambda h: k_ref[0, :, h * Dh:(h + 1) * Dh],
        lambda h: v_ref[0, :, h * Dh:(h + 1) * Dh],
        kpm, o_ref, H, Dh, False, T, S)


# ---------------------------------------------------------------------------
# Thin wrappers around pallas_call
# ---------------------------------------------------------------------------

def pallas_linear(x2d, w, b=None, activation=None, out_dtype=jnp.bfloat16,
                  tm=256, tn=512, tk=512):
    """x2d: [M, K], w: [K, N] bf16 pre-transposed, b: [N] f32 or None."""
    x2d = x2d.astype(jnp.bfloat16)     # no-op when the producer already emitted bf16
    M, K = x2d.shape
    _, N = w.shape
    tm = _tile(M, tm, (256, 128, 8))
    tn = _tile(N, tn, (256, 128))
    tk = _tile(K, tk, (256, 128))
    grid = (M // tm, N // tn, K // tk)

    in_specs = [pl.BlockSpec((tm, tk), lambda i, j, k: (i, k)),
                pl.BlockSpec((tk, tn), lambda i, j, k: (k, j))]
    args = [x2d, w]
    if b is not None:
        in_specs.append(pl.BlockSpec((1, tn), lambda i, j, k: (0, j)))
        args.append(b.reshape(1, N).astype(jnp.float32))
        kernel = functools.partial(_matmul_bias_kernel, activation=activation)
    else:
        kernel = functools.partial(_matmul_nobias_kernel, activation=activation)

    # TODO(synk): pipeline_mode=pl.Buffered(3) on x/w specs if DMA stays exposed at big tk.
    return pl.pallas_call(
        kernel,
        out_shape=jax.ShapeDtypeStruct((M, N), out_dtype),
        grid_spec=pltpu.PrefetchScalarGridSpec(
            num_scalar_prefetch=0, grid=grid,
            in_specs=in_specs,
            out_specs=pl.BlockSpec((tm, tn), lambda i, j, k: (i, j)),
            scratch_shapes=[pltpu.VMEM((tm, tn), jnp.float32)]),
        compiler_params=pltpu.CompilerParams(
            dimension_semantics=("parallel", "parallel", "arbitrary"),
            vmem_limit_bytes=_VMEM_LIMIT),
    )(*args)


def pallas_linear_res_ln(x2d, w, b, res2d, gamma, beta, out_dtype=jnp.bfloat16,
                         tm=256, tk=512):
    """Fused: LayerNorm(x2d @ w + b + res2d).  Output last dim held in one tile."""
    x2d = x2d.astype(jnp.bfloat16)
    M, K = x2d.shape
    N = w.shape[1]
    tm = _tile(M, tm, (256, 128, 8))
    tk = _tile(K, tk, (256, 128))
    grid = (M // tm, K // tk)

    return pl.pallas_call(
        _matmul_bias_res_ln_kernel,
        out_shape=jax.ShapeDtypeStruct((M, N), out_dtype),
        grid_spec=pltpu.PrefetchScalarGridSpec(
            num_scalar_prefetch=0, grid=grid,
            in_specs=[
                pl.BlockSpec((tm, tk), lambda i, k: (i, k)),
                pl.BlockSpec((tk, N), lambda i, k: (k, 0)),
                pl.BlockSpec((1, N), lambda i, k: (0, 0)),
                pl.BlockSpec((tm, N), lambda i, k: (i, 0)),
                pl.BlockSpec((1, N), lambda i, k: (0, 0)),
                pl.BlockSpec((1, N), lambda i, k: (0, 0)),
            ],
            out_specs=pl.BlockSpec((tm, N), lambda i, k: (i, 0)),
            scratch_shapes=[pltpu.VMEM((tm, N), jnp.float32)]),
        compiler_params=pltpu.CompilerParams(
            dimension_semantics=("parallel", "arbitrary"),
            vmem_limit_bytes=_VMEM_LIMIT),
    )(x2d, w,
      b.reshape(1, N).astype(jnp.float32),
      res2d.astype(jnp.bfloat16),
      gamma.reshape(1, N).astype(jnp.float32),
      beta.reshape(1, N).astype(jnp.float32))


def pallas_layer_norm(x2d, gamma, beta, out_dtype=jnp.bfloat16, tm=512):
    """Standalone LayerNorm over last dim (embedding LN only)."""
    M, D = x2d.shape
    tm = _tile(M, tm, (256, 128, 8))
    grid = (M // tm,)
    row_spec = pl.BlockSpec((tm, D), lambda i: (i, 0))
    gb_spec = pl.BlockSpec((1, D), lambda i: (0, 0))
    return pl.pallas_call(
        _layernorm_kernel,
        out_shape=jax.ShapeDtypeStruct((M, D), out_dtype),
        grid_spec=pltpu.PrefetchScalarGridSpec(
            num_scalar_prefetch=0, grid=grid,
            in_specs=[row_spec, gb_spec, gb_spec],
            out_specs=row_spec),
        compiler_params=pltpu.CompilerParams(
            dimension_semantics=("parallel",),
            vmem_limit_bytes=_VMEM_LIMIT),
    )(x2d, gamma.reshape(1, D).astype(jnp.float32),
      beta.reshape(1, D).astype(jnp.float32))


def pallas_self_attention(qkv3, kpm, H, causal):
    """qkv3: [B, T, 3D] bf16 (fused, q pre-scaled), kpm: [B, T] f32 additive."""
    B, T, threeD = qkv3.shape
    D = threeD // 3
    kernel = functools.partial(_self_attention_kernel, H=H, causal=causal)
    return pl.pallas_call(
        kernel,
        out_shape=jax.ShapeDtypeStruct((B, T, D), jnp.bfloat16),
        grid_spec=pltpu.PrefetchScalarGridSpec(
            num_scalar_prefetch=0, grid=(B,),
            in_specs=[pl.BlockSpec((1, T, threeD), lambda b: (b, 0, 0)),
                      pl.BlockSpec((1, 1, T), lambda b: (b, 0, 0))],
            out_specs=pl.BlockSpec((1, T, D), lambda b: (b, 0, 0))),
        compiler_params=pltpu.CompilerParams(
            dimension_semantics=("parallel",),
            vmem_limit_bytes=_VMEM_LIMIT),
    )(qkv3, kpm.reshape(B, 1, T).astype(jnp.float32))


def pallas_cross_attention(q3, k3, v3, kpm, H):
    """q3: [B, T, D] bf16 (pre-scaled), k3/v3: [B, S, D] bf16, kpm: [B, S] f32 additive."""
    B, T, D = q3.shape
    S = k3.shape[1]
    kernel = functools.partial(_cross_attention_kernel, H=H)
    return pl.pallas_call(
        kernel,
        out_shape=jax.ShapeDtypeStruct((B, T, D), jnp.bfloat16),
        grid_spec=pltpu.PrefetchScalarGridSpec(
            num_scalar_prefetch=0, grid=(B,),
            in_specs=[pl.BlockSpec((1, T, D), lambda b: (b, 0, 0)),
                      pl.BlockSpec((1, S, D), lambda b: (b, 0, 0)),
                      pl.BlockSpec((1, S, D), lambda b: (b, 0, 0)),
                      pl.BlockSpec((1, 1, S), lambda b: (b, 0, 0))],
            out_specs=pl.BlockSpec((1, T, D), lambda b: (b, 0, 0))),
        compiler_params=pltpu.CompilerParams(
            dimension_semantics=("parallel",),
            vmem_limit_bytes=_VMEM_LIMIT),
    )(q3, k3, v3, kpm.reshape(B, 1, S).astype(jnp.float32))


# ---------------------------------------------------------------------------
# Model building blocks — residual stream kept as 2D [B*T, D] bf16
# ---------------------------------------------------------------------------

def decoder_layer(x2d, lp, B, T, H, causal, kpm_self, kpm_enc, enc_k, enc_v):
    D = x2d.shape[1]

    # --- self attention (fused QKV, out_proj fused with residual-add + LN) ---
    sa = lp["self_attn"]
    qkv = pallas_linear(x2d, sa["qkv_w"], sa["qkv_b"])                # [B*T, 3D] bf16
    qkv3 = qkv.reshape(B, T, 3 * D)
    attn = pallas_self_attention(qkv3, kpm_self, H, causal)          # [B, T, D] bf16
    x2d = pallas_linear_res_ln(attn.reshape(B * T, D), sa["o_w"], sa["o_b"],
                               x2d, lp["self_ln_g"], lp["self_ln_b"])
    # new decoder keys/values in the reference's seq-first [T, B, D] layout
    new_k = qkv3[:, :, D:2 * D].transpose(1, 0, 2)
    new_v = qkv3[:, :, 2 * D:3 * D].transpose(1, 0, 2)

    # --- encoder-decoder attention (cached k/v, no causal mask) ---
    ca = lp["enc_attn"]
    q3 = pallas_linear(x2d, ca["q_w"], ca["q_b"]).reshape(B, T, D)   # pre-scaled
    attn = pallas_cross_attention(q3, enc_k, enc_v, kpm_enc, H)
    x2d = pallas_linear_res_ln(attn.reshape(B * T, D), ca["o_w"], ca["o_b"],
                               x2d, lp["enc_ln_g"], lp["enc_ln_b"])

    # --- feed-forward (gelu fused into fc1, fc2 fused with residual-add + LN) ---
    h = pallas_linear(x2d, lp["fc1_w"], lp["fc1_b"], activation="gelu")
    x2d = pallas_linear_res_ln(h, lp["fc2_w"], lp["fc2_b"],
                               x2d, lp["final_ln_g"], lp["final_ln_b"])
    return x2d, new_k, new_v


def transformer_decoder_forward(tokens, params, cfg, cached_encoder_padding_mask,
                                cached_encoder_keys, cached_encoder_values,
                                position_offset=0):
    """tokens: [B, T] int32. Returns (logits [B,T,V] f32, new_dec_keys, new_dec_values)."""
    padding_idx = cfg["padding_idx"]
    D = cfg["d_model"]
    H = cfg["heads"]
    B, T = tokens.shape

    # LearnedPositionalEmbedding: fairseq make_positions + clamp
    nonpad = (tokens != padding_idx).astype(jnp.int32)
    positions = (jnp.cumsum(nonpad, axis=1) + position_offset) * nonpad + padding_idx
    positions = jnp.minimum(positions, params["pos_emb"].shape[0] - 1)

    x = params["tok_emb"][tokens] + params["pos_emb"][positions]      # [B, T, D] f32
    x2d = pallas_layer_norm(x.reshape(B * T, D),
                            params["ln_emb_g"], params["ln_emb_b"])   # [B*T, D] bf16

    # tiny additive f32 masks (no [B,H,T,S] bias, causal bias is built in-kernel)
    kpm_self = jnp.where(tokens == padding_idx, _NEG, 0.0).astype(jnp.float32)  # [B, T]
    causal = (position_offset == 0)                                   # static Python bool

    S_enc = cached_encoder_keys[0].shape[0]
    if cached_encoder_padding_mask is not None:
        kpm_enc = jnp.where(cached_encoder_padding_mask, _NEG, 0.0).astype(jnp.float32)
    else:
        kpm_enc = jnp.zeros((B, S_enc), jnp.float32)

    # TODO(synk): incremental decoding (cached_decoder_keys/values concat) not implemented.
    new_keys, new_vals = [], []
    for idx, lp in enumerate(params["layers"]):
        enc_k = cached_encoder_keys[idx].transpose(1, 0, 2).astype(jnp.bfloat16)  # [B,S,D]
        enc_v = cached_encoder_values[idx].transpose(1, 0, 2).astype(jnp.bfloat16)
        x2d, nk, nv = decoder_layer(x2d, lp, B, T, H, causal,
                                    kpm_self, kpm_enc, enc_k, enc_v)
        new_keys.append(nk)
        new_vals.append(nv)

    # logits = F.linear(x, embed_tokens.weight) — tied weights, no bias (f32 logits)
    V = params["lm_head_w"].shape[1]
    logits = pallas_linear(x2d, params["lm_head_w"],
                           out_dtype=jnp.float32).reshape(B, T, V)
    return logits, new_keys, new_vals


# ---------------------------------------------------------------------------
# Deterministic parameter initialization (synthetic, no checkpoint)
# Weights stored pre-transposed [in, out] in bf16; biases / LN params in f32.
# ---------------------------------------------------------------------------

def init_params(key, cfg):
    D, H, Ff, L = cfg["d_model"], cfg["heads"], cfg["ffn"], cfg["layers"]
    V, P, MP = cfg["vocab"], cfg["padding_idx"], cfg["max_pos"]
    Dh = D // H
    scaling = Dh ** (-0.5)
    keys = iter(jax.random.split(key, 1024))

    def nrm(shape, scale=0.02):
        return jax.random.normal(next(keys), shape, jnp.float32) * scale

    def attn_p():
        # created in PyTorch nn.Linear layout [out, in], then pre-transposed once.
        # 1/sqrt(Dh) folded into the q projection (weight AND bias).
        q_w, q_b = nrm((D, D)) * scaling, nrm((D,)) * scaling
        k_w, k_b = nrm((D, D)), nrm((D,))
        v_w, v_b = nrm((D, D)), nrm((D,))
        o_w, o_b = nrm((D, D)), nrm((D,))
        return {
            "qkv_w": jnp.concatenate([q_w.T, k_w.T, v_w.T], axis=1).astype(jnp.bfloat16),
            "qkv_b": jnp.concatenate([q_b, k_b, v_b]).astype(jnp.float32),
            "q_w": q_w.T.astype(jnp.bfloat16), "q_b": q_b.astype(jnp.float32),
            "o_w": o_w.T.astype(jnp.bfloat16), "o_b": o_b.astype(jnp.float32),
        }

    tok_emb = nrm((V, D)).at[P].set(0.0)
    params = {
        "tok_emb": tok_emb,                                   # f32 for the gather
        "lm_head_w": tok_emb.T.astype(jnp.bfloat16),          # [D, V] for the LM head
        "pos_emb": nrm((MP + P + 1, D)).at[P].set(0.0),
        "ln_emb_g": jnp.ones((D,), jnp.float32),
        "ln_emb_b": jnp.zeros((D,), jnp.float32),
        "layers": [],
    }
    for _ in range(L):
        params["layers"].append({
            "self_attn": attn_p(),
            "enc_attn": attn_p(),
            "self_ln_g": jnp.ones((D,), jnp.float32),
            "self_ln_b": jnp.zeros((D,), jnp.float32),
            "enc_ln_g": jnp.ones((D,), jnp.float32),
            "enc_ln_b": jnp.zeros((D,), jnp.float32),
            "fc1_w": nrm((Ff, D)).T.astype(jnp.bfloat16), "fc1_b": nrm((Ff,)),
            "fc2_w": nrm((D, Ff)).T.astype(jnp.bfloat16), "fc2_b": nrm((D,)),
            "final_ln_g": jnp.ones((D,), jnp.float32),
            "final_ln_b": jnp.zeros((D,), jnp.float32),
        })
    return params


# ---------------------------------------------------------------------------
# Main
# ---------------------------------------------------------------------------

if __name__ == "__main__":
    cfg = dict(d_model=32, heads=4, ffn=64, layers=2,
               vocab=50, padding_idx=1, max_pos=16)

    key = jax.random.PRNGKey(0)
    pkey, ekey = jax.random.split(key)
    params = init_params(pkey, cfg)

    B, T, S_enc = 2, 8, 10
    # token 0 is non-pad in every row so no attention row is fully masked.
    tokens = jnp.array([[2, 5, 7, 9, 11, 13, 4, 6],
                        [2, 8, 3, 12, 1, 1, 1, 1]], dtype=jnp.int32)

    ek = jax.random.split(ekey, 2 * cfg["layers"])
    cached_encoder_keys = [
        jax.random.normal(ek[2 * i], (S_enc, B, cfg["d_model"]), jnp.float32)
        for i in range(cfg["layers"])]
    cached_encoder_values = [
        jax.random.normal(ek[2 * i + 1], (S_enc, B, cfg["d_model"]), jnp.float32)
        for i in range(cfg["layers"])]
    cached_encoder_padding_mask = jnp.array(
        [[False] * S_enc,
         [False] * 7 + [True] * 3], dtype=bool)

    logits, new_dec_keys, new_dec_vals = transformer_decoder_forward(
        tokens, params, cfg,
        cached_encoder_padding_mask,
        cached_encoder_keys, cached_encoder_values,
        position_offset=0)

    jax.block_until_ready(logits)
    for a in new_dec_keys + new_dec_vals:
        jax.block_until_ready(a)

    assert logits.shape == (B, T, cfg["vocab"])
    assert new_dec_keys[0].shape == (T, B, cfg["d_model"])
    assert jnp.all(jnp.isfinite(logits))
    print("KERNEL_OK")
</pallas_src>

<mosaic_0001>
module attributes {stable_mosaic.version = 11 : i64} {
  func.func @_layernorm_kernel(%arg0: i32, %arg1: memref<16x32xf32, #tpu.memory_space<vmem>>, %arg2: memref<1x32xf32, #tpu.memory_space<vmem>>, %arg3: memref<1x32xf32, #tpu.memory_space<vmem>>, %arg4: memref<16x32xbf16, #tpu.memory_space<vmem>>) attributes {dimension_semantics = [#tpu.dimension_semantics<parallel>], iteration_bounds = array<i64: 1>, scalar_prefetch = 0 : i64, scratch_operands = 0 : i64, tpu.core_type = #tpu.core_type<tc>, window_params = [{transform_indices = @transform_0, window_bounds = array<i64: 16, 32>}, {pipeline_mode = #tpu.pipeline_mode<synchronous>, transform_indices = @transform_1, window_bounds = array<i64: 1, 32>}, {pipeline_mode = #tpu.pipeline_mode<synchronous>, transform_indices = @transform_2, window_bounds = array<i64: 1, 32>}, {transform_indices = @transform_3, window_bounds = array<i64: 16, 32>}]} {
    %c0 = arith.constant 0 : index
    %c0_0 = arith.constant 0 : index
    %0 = vector.load %arg1[%c0, %c0_0] : memref<16x32xf32, #tpu.memory_space<vmem>>, vector<16x32xf32>
    %c0_1 = arith.constant 0 : index
    %c0_2 = arith.constant 0 : index
    %1 = vector.load %arg2[%c0_1, %c0_2] : memref<1x32xf32, #tpu.memory_space<vmem>>, vector<1x32xf32>
    %c0_3 = arith.constant 0 : index
    %c0_4 = arith.constant 0 : index
    %2 = vector.load %arg3[%c0_3, %c0_4] : memref<1x32xf32, #tpu.memory_space<vmem>>, vector<1x32xf32>
    %cst = arith.constant dense<0.000000e+00> : vector<16xf32>
    %3 = vector.multi_reduction <add>, %0, %cst [1] : vector<16x32xf32> to vector<16xf32>
    %4 = vector.shape_cast %3 : vector<16xf32> to vector<16x1xf32>
    %cst_5 = arith.constant 3.200000e+01 : f32
    %5 = vector.broadcast %cst_5 : f32 to vector<16x1xf32>
    %6 = arith.divf %4, %5 : vector<16x1xf32>
    %7 = vector.broadcast %6 : vector<16x1xf32> to vector<16x32xf32>
    %8 = arith.subf %0, %7 : vector<16x32xf32>
    %9 = arith.mulf %8, %8 : vector<16x32xf32>
    %cst_6 = arith.constant dense<0.000000e+00> : vector<16xf32>
    %10 = vector.multi_reduction <add>, %9, %cst_6 [1] : vector<16x32xf32> to vector<16xf32>
    %11 = vector.shape_cast %10 : vector<16xf32> to vector<16x1xf32>
    %cst_7 = arith.constant 3.200000e+01 : f32
    %12 = vector.broadcast %cst_7 : f32 to vector<16x1xf32>
    %13 = arith.divf %11, %12 : vector<16x1xf32>
    %cst_8 = arith.constant 9.99999974E-6 : f32
    %14 = vector.broadcast %cst_8 : f32 to vector<16x1xf32>
    %15 = arith.addf %13, %14 : vector<16x1xf32>
    %16 = math.rsqrt %15 : vector<16x1xf32>
    %17 = vector.broadcast %16 : vector<16x1xf32> to vector<16x32xf32>
    %18 = arith.mulf %8, %17 : vector<16x32xf32>
    %19 = vector.broadcast %1 : vector<1x32xf32> to vector<16x32xf32>
    %20 = arith.mulf %18, %19 : vector<16x32xf32>
    %21 = vector.broadcast %2 : vector<1x32xf32> to vector<16x32xf32>
    %22 = arith.addf %20, %21 : vector<16x32xf32>
    %23 = arith.truncf %22 : vector<16x32xf32> to vector<16x32xbf16>
    %c0_9 = arith.constant 0 : index
    %c0_10 = arith.constant 0 : index
    %24 = vector.load %arg4[%c0_9, %c0_10] : memref<16x32xbf16, #tpu.memory_space<vmem>>, vector<16x32xbf16>
    tpu.vector_store %arg4[%c0_9, %c0_10], %23 {strides = array<i32>} : memref<16x32xbf16, #tpu.memory_space<vmem>>, vector<16x32xbf16>,
    return
  }
  func.func @transform_0(%arg0: i32) -> (i32, i32) {
    %c0_i32 = arith.constant 0 : i32
    %c0_i32_0 = arith.constant 0 : i32
    return %arg0, %c0_i32 : i32, i32
  }
  func.func @transform_1(%arg0: i32) -> (i32, i32) {
    %c0_i32 = arith.constant 0 : i32
    %c0_i32_0 = arith.constant 0 : i32
    %c0_i32_1 = arith.constant 0 : i32
    return %c0_i32, %c0_i32_0 : i32, i32
  }
  func.func @transform_2(%arg0: i32) -> (i32, i32) {
    %c0_i32 = arith.constant 0 : i32
    %c0_i32_0 = arith.constant 0 : i32
    %c0_i32_1 = arith.constant 0 : i32
    return %c0_i32, %c0_i32_0 : i32, i32
  }
  func.func @transform_3(%arg0: i32) -> (i32, i32) {
    %c0_i32 = arith.constant 0 : i32
    %c0_i32_0 = arith.constant 0 : i32
    return %arg0, %c0_i32 : i32, i32
  }
}

</mosaic_0001>

<bundles_post_ra>
// kernel: tpu_custom_call.1
= control target key start
LH: loop header
LB: loop body
LE: loop exit
PB: predicated region body
PF: predicated region fallthrough
CT: control target
= control target key end

     0   :  { %8 = vsyncpa [#allocation3], 0  ;;  %s229_s0 = inlined_call_operand.hbm [shape: f32[16,32], index: 0, kind: input, shape index: {}]   ;;  %s230_s1 = inlined_call_operand.vmem [shape: f32[1,32], index: 1, kind: input, shape index: {}]   ;;  %s231_s2 = inlined_call_operand.vmem [shape: f32[1,32], index: 2, kind: input, shape index: {}]   ;;  %s232_s3 = inlined_call_operand.hbm [shape: bf16[16,32], index: 3, kind: output, shape index: {}]  }
   0x1   :  { %9 = vsyncpa [#allocation4], 0  ;;  %s169_s12 = smov [#allocation2]   ;;  %s121_s16 = scalar_lea.hbm %s229_s0, 256 }
   0x2   :  { %s15_s13 = sshll.u32 %s169_s12, 4  ;;  %p122_p0 = scmp.ne.s32.totalorder %s229_s0, %s121_s16  ;;  %s16_s13 = int_to_ptr.vmem [resolvable:$true] %s15_s13 }
   0x3   :  { %p125_p1 = scmp.lt.u32.totalorder %s121_s16, %s229_s0 }
   0x5   :  { %p127_p2 = pnand %p125_p1, %p122_p0 }
   0x7   :  { %130 = shalt.err (!%p127_p2)
}
   0x8   :  { %s131_s21 = scalar_lea.vmem %s16_s13, 256  ;;  %p136_p4 = scmp.lt.s32.totalorder %s16_s13, %s16_s13 }
   0x9   :  { %p132_p3 = scmp.ne.s32.totalorder %s16_s13, %s131_s21  ;;  %p137_p5 = scmp.lt.s32.totalorder %s131_s21, %s131_s21 }
   0xb   :  { %p138_p6 = por %p137_p5, %p136_p4 }
   0xd   :  { %p139_p7 = pnand %p138_p6, %p132_p3 }
   0xf   :  { %142 = shalt.err (!%p139_p7)
}
  0x10   :  { %s170_s22 = smov 128   ;;  %s171_s23 = smov 8  }
  0x11   :  { %21 = dma.hbm_to_vmem [thread:$0]  %s229_s0, 256, %s16_s13, [#allocation3], %s170_s22, %s170_s22, %s171_s23  }
  0x12   :  { %165 = dma.done.wait [#allocation3], 256  }
  0x13   :  { %166 = vsyncadd [#allocation3], 4294967040  ;;  %vm33_vm0 = vcmask 261120   ;;  %v29_v0 = vld [vmem:[#allocation2] sm:$0xff]  ;;  %v30_v1 = vld [vmem:[#allocation2 + $0x8] sm:$0xff]  ;;  %vm85_vm1 = vcmask 257024  }
  0x14   :  { %v34_v2 = vsel %vm33_vm0, %v29_v0, 0.0  ;;  %v37_v3 = vsel %vm33_vm0, %v30_v1, 0.0  ;;  %v105_v21 = vld [vmem:[%s230_s1] ss:$0 sm:$0xff]  ;;  %s172_s29 = smov [#allocation5]  }
  0x15   :  { %35 = vadd.xlane.f32.xlu0 %v34_v2  ;;  %v106_v23 = vld [vmem:[%s231_s2] ss:$0 sm:$0xff]  ;;  %s93_s30 = sshll.u32 %s172_s29, 4  ;;  %s94_s30 = int_to_ptr.vmem [resolvable:$true] %s93_s30 }
  0x16   :  { %s143_s1 = scalar_lea.vmem %s94_s30, 128  ;;  %p148_p9 = scmp.lt.s32.totalorder %s94_s30, %s94_s30 }
  0x17   :  { %p144_p8 = scmp.ne.s32.totalorder %s94_s30, %s143_s1  ;;  %p149_p10 = scmp.lt.s32.totalorder %s143_s1, %s143_s1 }
  0x19   :  { %38 = vadd.xlane.f32.xlu0 %v37_v3  ;;  %p150_p11 = por %p149_p10, %p148_p9 }
  0x1b   :  { %p151_p12 = pnand %p150_p11, %p144_p8 }
  0xa2   :  { %v36_v4 = vpop.xlane.xlu0 %35 }
  0xa3   :  { %v41_v5 = vmul.f32 0.03125, %v36_v4 }
  0xa5   :  { %v43_v6 = vsub.f32 %v29_v0, %v41_v5 }
  0xa6   :  { %v39_v7 = vpop.xlane.xlu0 %38 }
  0xa7   :  { %v42_v8 = vmul.f32 0.03125, %v39_v7  ;;  %v45_v9 = vmul.f32 %v43_v6, %v43_v6 }
  0xa9   :  { %v44_v10 = vsub.f32 %v30_v1, %v42_v8  ;;  %v47_v11 = vsel %vm33_vm0, %v45_v9, 0.0 }
  0xaa   :  { %48 = vadd.xlane.f32.xlu1 %v47_v11 }
  0xab   :  { %v46_v12 = vmul.f32 %v44_v10, %v44_v10 }
  0xad   :  { %v50_v13 = vsel %vm33_vm0, %v46_v12, 0.0 }
  0xae   :  { %51 = vadd.xlane.f32.xlu1 %v50_v13 }
 0x137   :  { %v49_v14 = vpop.xlane.xlu1 %48 }
 0x138   :  { %v53_v15 = vmul.f32 0.03125, %v49_v14 }
 0x13a   :  { %v55_v16 = vadd.f32 1e-05, %v53_v15 }
 0x13b   :  { %v52_v17 = vpop.xlane.xlu1 %51 }
 0x13c   :  { %117 = vrsqrt.f32 %v55_v16  ;;  %v54_v18 = vmul.f32 0.03125, %v52_v17 }
 0x13e   :  { %v56_v19 = vadd.f32 1e-05, %v54_v18 }
 0x140   :  { %119 = vrsqrt.f32 %v56_v19 }
 0x146   :  { %v118_v20 = vpop.eup %117 }
 0x147   :  { %v59_v22 = vmul.f32 %v118_v20, %v43_v6 }
 0x149   :  { %v67_v24 = vmul.f32 %v105_v21, %v59_v22 }
 0x14a   :  { %v120_v25 = vpop.eup %119 }
 0x14b   :  { %v60_v26 = vmul.f32 %v120_v25, %v44_v10  ;;  %v75_v27 = vadd.f32 %v106_v23, %v67_v24 }
 0x14d   :  { %v68_v28 = vmul.f32 %v105_v21, %v60_v26  ;;  %v109_v29 = vpack.c.bf16 %v75_v27, %v75_v27 }
 0x14f   :  { %v76_v30 = vadd.f32 %v106_v23, %v68_v28  ;;  %86 = vst.msk [vmem:[#allocation5] sm:$0xf] %vm85_vm1, %v109_v29 }
 0x151   :  { %v110_v31 = vpack.c.bf16 %v76_v30, %v76_v30 }
 0x153   :  { %87 = vst.msk [vmem:[#allocation5 + $0x4] sm:$0xf] %vm85_vm1, %v110_v31 }
 0x154   :  { %154 = shalt.err (!%p151_p12)
}
 0x155   :  { %s155_s5 = scalar_lea.hbm %s232_s3, 128 }
 0x156   :  { %p156_p13 = scmp.ne.s32.totalorder %s232_s3, %s155_s5  ;;  %p159_p0 = scmp.lt.u32.totalorder %s155_s5, %s232_s3 }
 0x158   :  { %p161_p1 = pnand %p159_p0, %p156_p13 }
 0x15a   :  { %164 = shalt.err (!%p161_p1)
}
 0x15b   :  { %s173_s10 = smov 64   ;;  %s174_s11 = smov 4  }
 0x15c   :  { %99 = dma.vmem_to_hbm [thread:$0]  %s94_s30, 128, %s232_s3, [#allocation4], %s173_s10, %s173_s10, %s174_s11  }
 0x15d   :  { %167 = dma.done.wait [#allocation4], 128  }
 0x15e   :  { %168 = vsyncadd [#allocation4], 4294967168 }
 0x15f   :  { %103 = vsyncpa [#allocation3], 1 }
 0x160   :  { %104 = vsyncpa [#allocation4], 1 }

</bundles_post_ra>
